<compile_context>
chip_gen: v6e
topology: v6e:2x2x1
jax: 0.10.0
libtpu: 0.0.40
codegen_flags: <defaults>
</compile_context>

<pallas_src>
import functools

import jax
import jax.numpy as jnp
from jax.experimental import pallas as pl
from jax.experimental.pallas import tpu as pltpu


def _maxpool_construct_kernel(x_ref, gamma_ref, beta_ref, out_ref, t_ref,
                              *, S, w, eps):
    gamma = gamma_ref[...]          # (1, S) float32
    beta = beta_ref[...]            # (1, S) float32

    # One batch element, promoted to f32 for LN statistics / pooling scratch.
    x = x_ref[0].astype(jnp.float32)        # (S, S)

    def layer_norm(v):
        # v is f32 (rows, S); statistics in f32, cast only on the final store.
        mean = jnp.mean(v, axis=-1, keepdims=True)
        cent = v - mean
        var = jnp.mean(cent * cent, axis=-1, keepdims=True)
        y = cent * jax.lax.rsqrt(var + eps)
        return (y * gamma + beta).astype(out_ref.dtype)

    # Block 0: cat(dim=2) + final transpose round-trips, so rows [0, S) of the
    # output are x itself.
    out_ref[0, 0:S, :] = layer_norm(x)

    # Pool in transposed space so each pooled block writes a contiguous,
    # lane-dense row range of the output.  Single XLU transpose, kept in a
    # VMEM scratch; each level reads its w phases with sublane-strided loads
    # (no (rows//w, w, S) reshape relayouts).
    t_ref[...] = x.T                        # (S, S) f32

    cur_rows = S
    offset = S
    for level in range(3):                  # three pooling layers, same window
        new_rows = cur_rows // w
        pooled = t_ref[pl.ds(0, new_rows, stride=w), :]
        for k in range(1, w):
            pooled = jnp.maximum(pooled, t_ref[pl.ds(k, new_rows, stride=w), :])
        out_ref[0, offset:offset + new_rows, :] = layer_norm(pooled)
        if level < 2:
            # Feed the next pooling level (reads above already materialized).
            t_ref[0:new_rows, :] = pooled
        offset += new_rows
        cur_rows = new_rows


def maxpooling_construct(x, gamma, beta, *, window_size=2, eps=1e-5):
    B, L, D = x.shape
    assert L == D, "module requires seq_len == d_model for torch.cat(dim=2)"
    S = D
    w = int(window_size)
    cur = S
    lens = [S]
    for _ in range(3):
        assert cur % w == 0, "seq_len must be divisible by window_size**3"
        cur //= w
        lens.append(cur)
    total = sum(lens)

    kernel = functools.partial(_maxpool_construct_kernel, S=S, w=w, eps=float(eps))

    # LayerNorm affine params kept in f32 regardless of input dtype.
    gamma2 = gamma.reshape(1, S).astype(jnp.float32)
    beta2 = beta.reshape(1, S).astype(jnp.float32)

    # Raise the scoped VMEM limit so both the (1,S,S) input block and the
    # (1,total,S) output block stay double-buffered (v5e default is 16 MiB).
    itemsize = jnp.dtype(x.dtype).itemsize
    est = (2 * S * S * itemsize          # double-buffered input block
           + 2 * total * S * itemsize    # double-buffered output block
           + S * S * 4                   # f32 transpose/pooling scratch
           + 6 * S * S * 4)              # headroom for in-flight f32 temps
    vmem_limit = int(min(max(est, 32 * 1024 * 1024), 64 * 1024 * 1024))

    return pl.pallas_call(
        kernel,
        out_shape=jax.ShapeDtypeStruct((B, total, S), x.dtype),
        grid=(B,),
        in_specs=[
            pl.BlockSpec((1, S, S), lambda b: (b, 0, 0)),
            pl.BlockSpec((1, S), lambda b: (0, 0)),
            pl.BlockSpec((1, S), lambda b: (0, 0)),
        ],
        out_specs=pl.BlockSpec((1, total, S), lambda b: (b, 0, 0)),
        scratch_shapes=[pltpu.VMEM((S, S), jnp.float32)],
        compiler_params=pltpu.CompilerParams(
            dimension_semantics=("parallel",),
            vmem_limit_bytes=vmem_limit,
        ),
    )(x, gamma2, beta2)


def _reference(x, gamma, beta, window_size=2, eps=1e-5):
    # Pure-JAX transcription of the PyTorch forward.
    blocks = [jnp.transpose(x, (0, 2, 1))]          # enc_input.transpose(1, 2)
    cur = x
    for _ in range(3):
        Bc, C, Lc = cur.shape
        cur = jnp.max(cur.reshape(Bc, C, Lc // window_size, window_size), axis=-1)
        blocks.append(cur)
    cat = jnp.concatenate(blocks, axis=2)            # (B, S, total)
    t = jnp.transpose(cat, (0, 2, 1))                # (B, total, S)
    mean = jnp.mean(t, axis=-1, keepdims=True)
    var = jnp.mean((t - mean) ** 2, axis=-1, keepdims=True)
    return (t - mean) / jnp.sqrt(var + eps) * gamma + beta


if __name__ == "__main__":
    B = 2               # >= 2 keeps both v7x TensorCores busy
    d_model = 128       # seq_len == d_model; 128 → lane-dense loads/stores
    window_size = 2

    key = jax.random.PRNGKey(0)
    kx, kg, kb = jax.random.split(key, 3)
    x = jax.random.normal(kx, (B, d_model, d_model), dtype=jnp.float32)
    # Deterministic, non-trivial LayerNorm affine parameters.
    gamma = 1.0 + 0.1 * jax.random.normal(kg, (d_model,), dtype=jnp.float32)
    beta = 0.1 * jax.random.normal(kb, (d_model,), dtype=jnp.float32)

    out = maxpooling_construct(x, gamma, beta, window_size=window_size)
    out = jax.block_until_ready(out)

    ref = _reference(x, gamma, beta, window_size=window_size)
    assert out.shape == ref.shape, (out.shape, ref.shape)
    assert jnp.allclose(out, ref, atol=1e-5, rtol=1e-5), "mismatch vs reference"

    print("KERNEL_OK")
</pallas_src>

<mosaic_0001>
module attributes {stable_mosaic.version = 11 : i64} {
  func.func @_maxpool_construct_kernel(%arg0: i32, %arg1: memref<1x128x128xf32, #tpu.memory_space<vmem>>, %arg2: memref<1x128xf32, #tpu.memory_space<vmem>>, %arg3: memref<1x128xf32, #tpu.memory_space<vmem>>, %arg4: memref<1x240x128xf32, #tpu.memory_space<vmem>>, %arg5: memref<128x128xf32, #tpu.memory_space<vmem>>) attributes {dimension_semantics = [#tpu.dimension_semantics<parallel>], iteration_bounds = array<i64: 2>, scalar_prefetch = 0 : i64, scratch_operands = 1 : i64, tpu.core_type = #tpu.core_type<tc>, window_params = [{transform_indices = @transform_0, window_bounds = array<i64: 1, 128, 128>}, {pipeline_mode = #tpu.pipeline_mode<synchronous>, transform_indices = @transform_1, window_bounds = array<i64: 1, 128>}, {pipeline_mode = #tpu.pipeline_mode<synchronous>, transform_indices = @transform_2, window_bounds = array<i64: 1, 128>}, {transform_indices = @transform_3, window_bounds = array<i64: 1, 240, 128>}]} {
    %c0 = arith.constant 0 : index
    %c0_0 = arith.constant 0 : index
    %0 = vector.load %arg2[%c0, %c0_0] : memref<1x128xf32, #tpu.memory_space<vmem>>, vector<1x128xf32>
    %c0_1 = arith.constant 0 : index
    %c0_2 = arith.constant 0 : index
    %1 = vector.load %arg3[%c0_1, %c0_2] : memref<1x128xf32, #tpu.memory_space<vmem>>, vector<1x128xf32>
    %c0_3 = arith.constant 0 : index
    %c0_4 = arith.constant 0 : index
    %c0_5 = arith.constant 0 : index
    %2 = vector.load %arg1[%c0_3, %c0_4, %c0_5] : memref<1x128x128xf32, #tpu.memory_space<vmem>>, vector<1x128x128xf32>
    %3 = vector.shape_cast %2 : vector<1x128x128xf32> to vector<128x128xf32>
    %cst = arith.constant dense<0.000000e+00> : vector<128xf32>
    %4 = vector.multi_reduction <add>, %3, %cst [1] : vector<128x128xf32> to vector<128xf32>
    %5 = vector.shape_cast %4 : vector<128xf32> to vector<128x1xf32>
    %cst_6 = arith.constant 1.280000e+02 : f32
    %6 = vector.broadcast %cst_6 : f32 to vector<128x1xf32>
    %7 = arith.divf %5, %6 : vector<128x1xf32>
    %8 = vector.broadcast %7 : vector<128x1xf32> to vector<128x128xf32>
    %9 = arith.subf %3, %8 : vector<128x128xf32>
    %10 = arith.mulf %9, %9 : vector<128x128xf32>
    %cst_7 = arith.constant dense<0.000000e+00> : vector<128xf32>
    %11 = vector.multi_reduction <add>, %10, %cst_7 [1] : vector<128x128xf32> to vector<128xf32>
    %12 = vector.shape_cast %11 : vector<128xf32> to vector<128x1xf32>
    %cst_8 = arith.constant 1.280000e+02 : f32
    %13 = vector.broadcast %cst_8 : f32 to vector<128x1xf32>
    %14 = arith.divf %12, %13 : vector<128x1xf32>
    %cst_9 = arith.constant 9.99999974E-6 : f32
    %15 = vector.broadcast %cst_9 : f32 to vector<128x1xf32>
    %16 = arith.addf %14, %15 : vector<128x1xf32>
    %17 = math.rsqrt %16 : vector<128x1xf32>
    %18 = vector.broadcast %17 : vector<128x1xf32> to vector<128x128xf32>
    %19 = arith.mulf %9, %18 : vector<128x128xf32>
    %20 = vector.broadcast %0 : vector<1x128xf32> to vector<128x128xf32>
    %21 = arith.mulf %19, %20 : vector<128x128xf32>
    %22 = vector.broadcast %1 : vector<1x128xf32> to vector<128x128xf32>
    %23 = arith.addf %21, %22 : vector<128x128xf32>
    %c0_10 = arith.constant 0 : index
    %c0_11 = arith.constant 0 : index
    %c0_12 = arith.constant 0 : index
    %24 = vector.load %arg4[%c0_10, %c0_11, %c0_12] : memref<1x240x128xf32, #tpu.memory_space<vmem>>, vector<1x128x128xf32>
    %25 = vector.shape_cast %24 : vector<1x128x128xf32> to vector<128x128xf32>
    %26 = vector.shape_cast %23 : vector<128x128xf32> to vector<1x128x128xf32>
    tpu.vector_store %arg4[%c0_10, %c0_11, %c0_12], %26 {strides = array<i32>} : memref<1x240x128xf32, #tpu.memory_space<vmem>>, vector<1x128x128xf32>,
    %27 = tpu.transpose %3, [1, 0] : vector<128x128xf32> -> vector<128x128xf32>
    %c0_13 = arith.constant 0 : index
    %c0_14 = arith.constant 0 : index
    %28 = vector.load %arg5[%c0_13, %c0_14] : memref<128x128xf32, #tpu.memory_space<vmem>>, vector<128x128xf32>
    tpu.vector_store %arg5[%c0_13, %c0_14], %27 {strides = array<i32>} : memref<128x128xf32, #tpu.memory_space<vmem>>, vector<128x128xf32>,
    %c0_15 = arith.constant 0 : index
    %c0_16 = arith.constant 0 : index
    %29 = tpu.strided_load %arg5[%c0_15, %c0_16] {strides = array<i32: 2, 1>} : memref<128x128xf32, #tpu.memory_space<vmem>>, vector<64x128xf32>
    %c1 = arith.constant 1 : index
    %c0_17 = arith.constant 0 : index
    %30 = tpu.strided_load %arg5[%c1, %c0_17] {strides = array<i32: 2, 1>} : memref<128x128xf32, #tpu.memory_space<vmem>>, vector<64x128xf32>
    %31 = arith.maximumf %29, %30 : vector<64x128xf32>
    %cst_18 = arith.constant dense<0.000000e+00> : vector<64xf32>
    %32 = vector.multi_reduction <add>, %31, %cst_18 [1] : vector<64x128xf32> to vector<64xf32>
    %33 = vector.shape_cast %32 : vector<64xf32> to vector<64x1xf32>
    %cst_19 = arith.constant 1.280000e+02 : f32
    %34 = vector.broadcast %cst_19 : f32 to vector<64x1xf32>
    %35 = arith.divf %33, %34 : vector<64x1xf32>
    %36 = vector.broadcast %35 : vector<64x1xf32> to vector<64x128xf32>
    %37 = arith.subf %31, %36 : vector<64x128xf32>
    %38 = arith.mulf %37, %37 : vector<64x128xf32>
    %cst_20 = arith.constant dense<0.000000e+00> : vector<64xf32>
    %39 = vector.multi_reduction <add>, %38, %cst_20 [1] : vector<64x128xf32> to vector<64xf32>
    %40 = vector.shape_cast %39 : vector<64xf32> to vector<64x1xf32>
    %cst_21 = arith.constant 1.280000e+02 : f32
    %41 = vector.broadcast %cst_21 : f32 to vector<64x1xf32>
    %42 = arith.divf %40, %41 : vector<64x1xf32>
    %cst_22 = arith.constant 9.99999974E-6 : f32
    %43 = vector.broadcast %cst_22 : f32 to vector<64x1xf32>
    %44 = arith.addf %42, %43 : vector<64x1xf32>
    %45 = math.rsqrt %44 : vector<64x1xf32>
    %46 = vector.broadcast %45 : vector<64x1xf32> to vector<64x128xf32>
    %47 = arith.mulf %37, %46 : vector<64x128xf32>
    %48 = vector.broadcast %0 : vector<1x128xf32> to vector<64x128xf32>
    %49 = arith.mulf %47, %48 : vector<64x128xf32>
    %50 = vector.broadcast %1 : vector<1x128xf32> to vector<64x128xf32>
    %51 = arith.addf %49, %50 : vector<64x128xf32>
    %c0_23 = arith.constant 0 : index
    %c128 = arith.constant 128 : index
    %c0_24 = arith.constant 0 : index
    %52 = vector.load %arg4[%c0_23, %c128, %c0_24] : memref<1x240x128xf32, #tpu.memory_space<vmem>>, vector<1x64x128xf32>
    %53 = vector.shape_cast %52 : vector<1x64x128xf32> to vector<64x128xf32>
    %54 = vector.shape_cast %51 : vector<64x128xf32> to vector<1x64x128xf32>
    tpu.vector_store %arg4[%c0_23, %c128, %c0_24], %54 {strides = array<i32>} : memref<1x240x128xf32, #tpu.memory_space<vmem>>, vector<1x64x128xf32>,
    %c0_25 = arith.constant 0 : index
    %c0_26 = arith.constant 0 : index
    %55 = vector.load %arg5[%c0_25, %c0_26] : memref<128x128xf32, #tpu.memory_space<vmem>>, vector<64x128xf32>
    tpu.vector_store %arg5[%c0_25, %c0_26], %31 {strides = array<i32>} : memref<128x128xf32, #tpu.memory_space<vmem>>, vector<64x128xf32>,
    %c0_27 = arith.constant 0 : index
    %c0_28 = arith.constant 0 : index
    %56 = tpu.strided_load %arg5[%c0_27, %c0_28] {strides = array<i32: 2, 1>} : memref<128x128xf32, #tpu.memory_space<vmem>>, vector<32x128xf32>
    %c1_29 = arith.constant 1 : index
    %c0_30 = arith.constant 0 : index
    %57 = tpu.strided_load %arg5[%c1_29, %c0_30] {strides = array<i32: 2, 1>} : memref<128x128xf32, #tpu.memory_space<vmem>>, vector<32x128xf32>
    %58 = arith.maximumf %56, %57 : vector<32x128xf32>
    %cst_31 = arith.constant dense<0.000000e+00> : vector<32xf32>
    %59 = vector.multi_reduction <add>, %58, %cst_31 [1] : vector<32x128xf32> to vector<32xf32>
    %60 = vector.shape_cast %59 : vector<32xf32> to vector<32x1xf32>
    %cst_32 = arith.constant 1.280000e+02 : f32
    %61 = vector.broadcast %cst_32 : f32 to vector<32x1xf32>
    %62 = arith.divf %60, %61 : vector<32x1xf32>
    %63 = vector.broadcast %62 : vector<32x1xf32> to vector<32x128xf32>
    %64 = arith.subf %58, %63 : vector<32x128xf32>
    %65 = arith.mulf %64, %64 : vector<32x128xf32>
    %cst_33 = arith.constant dense<0.000000e+00> : vector<32xf32>
    %66 = vector.multi_reduction <add>, %65, %cst_33 [1] : vector<32x128xf32> to vector<32xf32>
    %67 = vector.shape_cast %66 : vector<32xf32> to vector<32x1xf32>
    %cst_34 = arith.constant 1.280000e+02 : f32
    %68 = vector.broadcast %cst_34 : f32 to vector<32x1xf32>
    %69 = arith.divf %67, %68 : vector<32x1xf32>
    %cst_35 = arith.constant 9.99999974E-6 : f32
    %70 = vector.broadcast %cst_35 : f32 to vector<32x1xf32>
    %71 = arith.addf %69, %70 : vector<32x1xf32>
    %72 = math.rsqrt %71 : vector<32x1xf32>
    %73 = vector.broadcast %72 : vector<32x1xf32> to vector<32x128xf32>
    %74 = arith.mulf %64, %73 : vector<32x128xf32>
    %75 = vector.broadcast %0 : vector<1x128xf32> to vector<32x128xf32>
    %76 = arith.mulf %74, %75 : vector<32x128xf32>
    %77 = vector.broadcast %1 : vector<1x128xf32> to vector<32x128xf32>
    %78 = arith.addf %76, %77 : vector<32x128xf32>
    %c0_36 = arith.constant 0 : index
    %c192 = arith.constant 192 : index
    %c0_37 = arith.constant 0 : index
    %79 = vector.load %arg4[%c0_36, %c192, %c0_37] : memref<1x240x128xf32, #tpu.memory_space<vmem>>, vector<1x32x128xf32>
    %80 = vector.shape_cast %79 : vector<1x32x128xf32> to vector<32x128xf32>
    %81 = vector.shape_cast %78 : vector<32x128xf32> to vector<1x32x128xf32>
    tpu.vector_store %arg4[%c0_36, %c192, %c0_37], %81 {strides = array<i32>} : memref<1x240x128xf32, #tpu.memory_space<vmem>>, vector<1x32x128xf32>,
    %c0_38 = arith.constant 0 : index
    %c0_39 = arith.constant 0 : index
    %82 = vector.load %arg5[%c0_38, %c0_39] : memref<128x128xf32, #tpu.memory_space<vmem>>, vector<32x128xf32>
    tpu.vector_store %arg5[%c0_38, %c0_39], %58 {strides = array<i32>} : memref<128x128xf32, #tpu.memory_space<vmem>>, vector<32x128xf32>,
    %c0_40 = arith.constant 0 : index
    %c0_41 = arith.constant 0 : index
    %83 = tpu.strided_load %arg5[%c0_40, %c0_41] {strides = array<i32: 2, 1>} : memref<128x128xf32, #tpu.memory_space<vmem>>, vector<16x128xf32>
    %c1_42 = arith.constant 1 : index
    %c0_43 = arith.constant 0 : index
    %84 = tpu.strided_load %arg5[%c1_42, %c0_43] {strides = array<i32: 2, 1>} : memref<128x128xf32, #tpu.memory_space<vmem>>, vector<16x128xf32>
    %85 = arith.maximumf %83, %84 : vector<16x128xf32>
    %cst_44 = arith.constant dense<0.000000e+00> : vector<16xf32>
    %86 = vector.multi_reduction <add>, %85, %cst_44 [1] : vector<16x128xf32> to vector<16xf32>
    %87 = vector.shape_cast %86 : vector<16xf32> to vector<16x1xf32>
    %cst_45 = arith.constant 1.280000e+02 : f32
    %88 = vector.broadcast %cst_45 : f32 to vector<16x1xf32>
    %89 = arith.divf %87, %88 : vector<16x1xf32>
    %90 = vector.broadcast %89 : vector<16x1xf32> to vector<16x128xf32>
    %91 = arith.subf %85, %90 : vector<16x128xf32>
    %92 = arith.mulf %91, %91 : vector<16x128xf32>
    %cst_46 = arith.constant dense<0.000000e+00> : vector<16xf32>
    %93 = vector.multi_reduction <add>, %92, %cst_46 [1] : vector<16x128xf32> to vector<16xf32>
    %94 = vector.shape_cast %93 : vector<16xf32> to vector<16x1xf32>
    %cst_47 = arith.constant 1.280000e+02 : f32
    %95 = vector.broadcast %cst_47 : f32 to vector<16x1xf32>
    %96 = arith.divf %94, %95 : vector<16x1xf32>
    %cst_48 = arith.constant 9.99999974E-6 : f32
    %97 = vector.broadcast %cst_48 : f32 to vector<16x1xf32>
    %98 = arith.addf %96, %97 : vector<16x1xf32>
    %99 = math.rsqrt %98 : vector<16x1xf32>
    %100 = vector.broadcast %99 : vector<16x1xf32> to vector<16x128xf32>
    %101 = arith.mulf %91, %100 : vector<16x128xf32>
    %102 = vector.broadcast %0 : vector<1x128xf32> to vector<16x128xf32>
    %103 = arith.mulf %101, %102 : vector<16x128xf32>
    %104 = vector.broadcast %1 : vector<1x128xf32> to vector<16x128xf32>
    %105 = arith.addf %103, %104 : vector<16x128xf32>
    %c0_49 = arith.constant 0 : index
    %c224 = arith.constant 224 : index
    %c0_50 = arith.constant 0 : index
    %106 = vector.load %arg4[%c0_49, %c224, %c0_50] : memref<1x240x128xf32, #tpu.memory_space<vmem>>, vector<1x16x128xf32>
    %107 = vector.shape_cast %106 : vector<1x16x128xf32> to vector<16x128xf32>
    %108 = vector.shape_cast %105 : vector<16x128xf32> to vector<1x16x128xf32>
    tpu.vector_store %arg4[%c0_49, %c224, %c0_50], %108 {strides = array<i32>} : memref<1x240x128xf32, #tpu.memory_space<vmem>>, vector<1x16x128xf32>,
    return
  }
  func.func @transform_0(%arg0: i32) -> (i32, i32, i32) {
    %c0_i32 = arith.constant 0 : i32
    %c0_i32_0 = arith.constant 0 : i32
    %c0_i32_1 = arith.constant 0 : i32
    return %arg0, %c0_i32, %c0_i32_0 : i32, i32, i32
  }
  func.func @transform_1(%arg0: i32) -> (i32, i32) {
    %c0_i32 = arith.constant 0 : i32
    %c0_i32_0 = arith.constant 0 : i32
    %c0_i32_1 = arith.constant 0 : i32
    return %c0_i32, %c0_i32_0 : i32, i32
  }
  func.func @transform_2(%arg0: i32) -> (i32, i32) {
    %c0_i32 = arith.constant 0 : i32
    %c0_i32_0 = arith.constant 0 : i32
    %c0_i32_1 = arith.constant 0 : i32
    return %c0_i32, %c0_i32_0 : i32, i32
  }
  func.func @transform_3(%arg0: i32) -> (i32, i32, i32) {
    %c0_i32 = arith.constant 0 : i32
    %c0_i32_0 = arith.constant 0 : i32
    %c0_i32_1 = arith.constant 0 : i32
    return %arg0, %c0_i32, %c0_i32_0 : i32, i32, i32
  }
}

</mosaic_0001>

<bundles_post_ra>
// kernel: tpu_custom_call.1
= control target key start
LH: loop header
LB: loop body
LE: loop exit
PB: predicated region body
PF: predicated region fallthrough
CT: control target
= control target key end

     0   :  { %8 = vsyncpa [#allocation4], 0  ;;  %s1682_s0 = inlined_call_operand.hbm [shape: f32[2,128,128], index: 0, kind: input, shape index: {}]   ;;  %s1683_s1 = inlined_call_operand.vmem [shape: f32[1,128], index: 1, kind: input, shape index: {}]   ;;  %s1684_s2 = inlined_call_operand.vmem [shape: f32[1,128], index: 2, kind: input, shape index: {}]   ;;  %s1685_s3 = inlined_call_operand.hbm [shape: f32[2,240,128], index: 3, kind: output, shape index: {}]  }
   0x1   :  { %10 = vsyncpa [#allocation4 + $0x1], 0 }
   0x2   :  { %11 = vsyncpa [#allocation5], 0 }
   0x3   :  { %13 = vsyncpa [#allocation5 + $0x1], 0  ;;  %s1093_s12 = smov 0   ;;  %s1095_s13 = smov 0  }
   0x4   :  { %s1097_s14 = smov 0   ;;  %s1099_s15 = smov 0  }
   0x5 LB: > { %s1114_s16 = sadd.s32 4294967295, %s1065_s15   ;;  %s847_s17 = sadd.s32 4294967294, %s1065_s15   ;;  %s1065_s15 = sphi %s1099_s15, %s1700_s15   ;;  %s1061_s14 = sphi %s1097_s14, %s1699_s14   ;;  %s1057_s13 = sphi %s1095_s13, %s1698_s13   ;;  %s1053_s12 = sphi %s1093_s12, %s1697_s12  }
   0x6   : > { %s1118_s18 = sadd.s32 1, %s1065_s15   ;;  %s26_s19 = sadd.s32 1, %s1061_s14 }
   0x7   : > { %s23_s20 = ssub.s32 %s1065_s15, %s1118_s18  ;;  %p33_p0 = scmp.ne.s32.totalorder %s1061_s14, %s1057_s13 }
   0x8   : > { %p24_p1 = scmp.eq.s32.totalorder %s23_s20, 0  ;;  %p34_p2 = scmp.eq.s32.totalorder %s1065_s15, 0 }
   0x9   : > { %p39_p3 = scmp.ne.s32.totalorder %s1057_s13, %s1053_s12  ;;  %p40_p4 = scmp.eq.s32.totalorder %s1114_s16, 0 }
   0xa   : > { %s1130_s21 = scalar_select %p24_p1, %s1061_s14, %s26_s19  }
   0xb   : > { %p1132_p5 = por %p34_p2, %p33_p0  ;;  %p1136_p6 = por %p40_p4, %p39_p3 }
   0xc   : > { %p105_p7 = scmp.eq.s32.totalorder %s1114_s16, 1  ;;  %p111_p8 = scmp.eq.s32.totalorder %s847_s17, 1 }
   0xd   : > { %s1689_s23 = scalar_select %p1136_p6, 1, 0 }
   0xe   : > { %p875_p10 = scmp.lt.s32.totalorder %s1065_s15, 2  ;;  %p1143_p11 = por %p105_p7, %p33_p0 }
   0xf   : > { %p1147_p12 = por %p111_p8, %p39_p3  ;;  %s137_s26 = sand.u32 1, %s1061_s14  }
  0x10   : > { %s1690_s24 = scalar_select %p1143_p11, 1, 0 }
  0x11   : > { %s1691_s25 = scalar_select %p1147_p12, 1, 0 }
  0x12   : > { %s860_s27 = sshll.u32 %s1065_s15, 11  ;;  %s850_s28 = sshll.u32 %s137_s26, 7 }
  0x13   : > { %s1156_s4 = scalar_lea.hbm %s1682_s0, %s860_s27  ;;  %s141_s5 = scalar_lea.vmem [#allocation3], %s850_s28 }
  0x14   : > { %s148_s6 = sshll.u32 %s141_s5, 4  ;;  %p1160_p13 = pnand %p875_p10, %p1132_p5  ;;  %s1164_s6 = int_to_ptr.vmem [resolvable:$true] %s148_s6 }
  0x15   : > { %s1166_s8 = scalar_lea.sflag [#allocation4], %s137_s26  ;;  %s973_s9 = scalar_lea.hbm %s1156_s4, 2048 }
  0x16   : > { %p974_p0 = scmp.ne.s32.totalorder %s1156_s4, %s973_s9  ;;  %p975_p1 = pneg %p1160_p13 }
  0x17   : > { %s978_s17 = scalar_lea.hbm %s1682_s0, 4096  ;;  %p979_p4 = scmp.lt.s32.totalorder %s1156_s4, %s1682_s0 }
  0x18   : > { %p976_p2 = pnand %p975_p1, %p974_p0  ;;  %p980_p5 = scmp.lt.s32.totalorder %s978_s17, %s973_s9 }
  0x1a   : > { %p977_p3 = pneg %p976_p2  ;;  %p981_p7 = por %p980_p5, %p979_p4 }
  0x1c   : > { %p982_p8 = pnand %p981_p7, %p977_p3 }
  0x1e   : > { %985 = shalt.err (!%p982_p8)
}
  0x1f   : > { %s986_s22 = scalar_lea.vmem %s1164_s6, 2048  ;;  %s1067_s26 = smov [#allocation3]  }
  0x20   : > { %p987_p10 = scmp.ne.s32.totalorder %s1164_s6, %s986_s22  ;;  %s991_s27 = sshll.u32 %s1067_s26, 4  ;;  %s992_s27 = int_to_ptr.vmem [resolvable:$false] %s991_s27 }
  0x21   : > { %s993_s28 = scalar_lea.vmem %s992_s27, 4096  ;;  %p994_p2 = scmp.lt.s32.totalorder %s1164_s6, %s992_s27 }
  0x22   : > { %p989_p9 = pnand %p987_p10, %p975_p1  ;;  %p995_p12 = scmp.lt.s32.totalorder %s993_s28, %s986_s22 }
  0x24   : > { %p990_p0 = pneg %p989_p9  ;;  %p996_p11 = por %p995_p12, %p994_p2 }
  0x26   : > { %p997_p6 = pnand %p996_p11, %p990_p0 }
  0x28   : > { %1000 = shalt.err (!%p997_p6)
}
  0x29   : > { %s1068_s29 = smov 128   ;;  %s1069_s30 = smov 8  }
  0x2a   : > { %870 = dma.hbm_to_vmem [thread:$0]  (!%p1160_p13), %s1156_s4, 2048, %s1164_s6, %s1166_s8, %s1068_s29, %s1068_s29, %s1069_s30  }
  0x2b   : > { %p853_p9 = scmp.ge.s32.totalorder %s1065_s15, 1  ;;  %p156_p1 = scmp.lt.s32.totalorder %s1065_s15, 3 }
  0x2d   : > { %p157_p3 = pnand %p853_p9, %p156_p1 }
  0x2e   : > { %s1190_s5 = sand.u32 (!%p157_p3), 1, %s1057_s13   ;;  %p1693_p6 = scmp.ne.s32.totalorder (!%p157_p3), %s1689_s23, 0 }
  0x2f   : > { %160 = sbr.rel (%p157_p3) target bundleno = 589 (0x24d), region = 32  ;;  %s854_s9 = sshll.u32 (!%p157_p3), %s1190_s5, 7 }
  0x30   : > { %s163_s10 = scalar_lea.sflag (!%p157_p3), [#allocation4], %s1190_s5  ;;  %s1194_s11 = scalar_lea.vmem (!%p157_p3), [#allocation3], %s854_s9 }
  0x34   : > { %1044 = dma.done.wait (%p1693_p6), %s163_s10, 2048  }
  0x35   : > { %1046 = vsyncadd (%p1693_p6), %s163_s10, 4294965248  ;;  %v1201_v0 = vld [vmem:[%s1194_s11] sm:$0xff]  ;;  %v1206_v1 = vld [vmem:[%s1194_s11 + $0x8] sm:$0xff]  ;;  %s861_s23 = smul.u32 240, %s1190_s5  ;;  %p1694_p12 = scmp.ne.s32.totalorder %s1690_s24, 0 }
  0x36   : > { %444 = vxpose.xlu0.b32.start [1/16] %v1201_v0, 128  ;;  %207 = vadd.xlane.f32.xlu1 %v1201_v0  ;;  %v1211_v2 = vld [vmem:[%s1194_s11 + $0x10] sm:$0xff]  ;;  %v1216_v3 = vld [vmem:[%s1194_s11 + $0x18] sm:$0xff]  ;;  %v1221_v4 = vld [vmem:[%s1194_s11 + $0x20] sm:$0xff]  ;;  %s862_s19 = smul.u32 3840, %s1114_s16  ;;  %s761_s16 = scalar_lea.sflag [#allocation5], %s1190_s5 }
  0x37   : > { %v1226_v5 = vld [vmem:[%s1194_s11 + $0x28] sm:$0xff]  ;;  %v1231_v6 = vld [vmem:[%s1194_s11 + $0x30] sm:$0xff]  ;;  %v1236_v7 = vld [vmem:[%s1194_s11 + $0x38] sm:$0xff]  ;;  %s1514_s17 = scalar_lea.vmem [#allocation6], %s861_s23  ;;  %s1070_s29 = smov [#allocation6]  }
  0x38   : > { %v1241_v8 = vld [vmem:[%s1194_s11 + $0x40] sm:$0xff]  ;;  %v1246_v9 = vld [vmem:[%s1194_s11 + $0x48] sm:$0xff]  ;;  %v1251_v10 = vld [vmem:[%s1194_s11 + $0x50] sm:$0xff]  ;;  %s774_s20 = sshll.u32 %s1514_s17, 4  ;;  %s1635_s27 = scalar_lea.hbm %s1685_s3, %s862_s19  ;;  %s1637_s20 = int_to_ptr.vmem [resolvable:$true] %s774_s20 }
  0x39   : > { %v1256_v11 = vld [vmem:[%s1194_s11 + $0x58] sm:$0xff]  ;;  %v1261_v12 = vld [vmem:[%s1194_s11 + $0x60] sm:$0xff]  ;;  %v1266_v13 = vld [vmem:[%s1194_s11 + $0x68] sm:$0xff]  ;;  %s1001_s28 = scalar_lea.vmem %s1637_s20, 3840  ;;  %s1005_s30 = sshll.u32 %s1070_s29, 4  ;;  %s1006_s30 = int_to_ptr.vmem [resolvable:$false] %s1005_s30 }
  0x3a   : > { %445 = vxpose.xlu0.b32.cont [2/16] %v1206_v1, 128  ;;  %209 = vadd.xlane.f32.xlu1 %v1206_v1  ;;  %v1271_v14 = vld [vmem:[%s1194_s11 + $0x70] sm:$0xff]  ;;  %v1276_v15 = vld [vmem:[%s1194_s11 + $0x78] sm:$0xff]  ;;  %p1002_p11 = scmp.ne.s32.totalorder %s1637_s20, %s1001_s28  ;;  %s1007_s9 = scalar_lea.vmem %s1006_s30, 7680 }
  0x3b   : > { %p1008_p5 = scmp.lt.s32.totalorder %s1637_s20, %s1006_s30  ;;  %p1009_p7 = scmp.lt.s32.totalorder %s1007_s9, %s1001_s28 }
  0x3c   : > { %p1003_p13 = pnand %p1002_p11, %p1694_p12 }
  0x3d   : > { %p1010_p8 = por %p1009_p7, %p1008_p5 }
  0x3e   : > { %446 = vxpose.xlu0.b32.cont [3/16] %v1211_v2, 128  ;;  %211 = vadd.xlane.f32.xlu1 %v1211_v2  ;;  %p1004_p4 = pneg %p1003_p13 }
  0x40   : > { %p1011_p10 = pnand %p1010_p8, %p1004_p4 }
  0x42   : > { %447 = vxpose.xlu0.b32.cont [4/16] %v1216_v3, 128  ;;  %213 = vadd.xlane.f32.xlu1 %v1216_v3 }
  0x46   : > { %448 = vxpose.xlu0.b32.cont [5/16] %v1221_v4, 128  ;;  %215 = vadd.xlane.f32.xlu1 %v1221_v4 }
  0x4a   : > { %449 = vxpose.xlu0.b32.cont [6/16] %v1226_v5, 128  ;;  %217 = vadd.xlane.f32.xlu1 %v1226_v5 }
  0x4e   : > { %450 = vxpose.xlu0.b32.cont [7/16] %v1231_v6, 128  ;;  %219 = vadd.xlane.f32.xlu1 %v1231_v6 }
  0x52   : > { %451 = vxpose.xlu0.b32.cont [8/16] %v1236_v7, 128  ;;  %221 = vadd.xlane.f32.xlu1 %v1236_v7 }
  0x56   : > { %452 = vxpose.xlu0.b32.cont [9/16] %v1241_v8, 128  ;;  %223 = vadd.xlane.f32.xlu1 %v1241_v8 }
  0x5a   : > { %453 = vxpose.xlu0.b32.cont [10/16] %v1246_v9, 128  ;;  %225 = vadd.xlane.f32.xlu1 %v1246_v9 }
  0x5e   : > { %454 = vxpose.xlu0.b32.cont [11/16] %v1251_v10, 128  ;;  %227 = vadd.xlane.f32.xlu1 %v1251_v10 }
  0x62   : > { %455 = vxpose.xlu0.b32.cont [12/16] %v1256_v11, 128  ;;  %229 = vadd.xlane.f32.xlu1 %v1256_v11 }
  0x66   : > { %456 = vxpose.xlu0.b32.cont [13/16] %v1261_v12, 128  ;;  %231 = vadd.xlane.f32.xlu1 %v1261_v12 }
  0x6a   : > { %457 = vxpose.xlu0.b32.cont [14/16] %v1266_v13, 128  ;;  %233 = vadd.xlane.f32.xlu1 %v1266_v13 }
  0x6e   : > { %458 = vxpose.xlu0.b32.cont [15/16] %v1271_v14, 128  ;;  %235 = vadd.xlane.f32.xlu1 %v1271_v14 }
  0x72   : > { %459 = vxpose.xlu0.b32.end [16/16] %v1276_v15, 128  ;;  %237 = vadd.xlane.f32.xlu1 %v1276_v15 }
  0xb2   : > { %v460_v16 = vpop.trf.xlu0 }
  0xb3   : > { %476 = vst [vmem:[#allocation2] sm:$0xff] %v460_v16 }
  0xb6   : > { %v461_v17 = vpop.trf.xlu0 }
  0xb7   : > { %477 = vst [vmem:[#allocation2 + $0x8] sm:$0xff] %v461_v17 }
  0xba   : > { %v462_v18 = vpop.trf.xlu0 }
  0xbb   : > { %478 = vst [vmem:[#allocation2 + $0x10] sm:$0xff] %v462_v18 }
  0xbe   : > { %v463_v19 = vpop.trf.xlu0  ;;  %v492_v20 = vld [vmem:[#allocation2] ss:$2 sm:$0xff]  ;;  %v508_v21 = vld [vmem:[#allocation2 + $0x1] ss:$2 sm:$0xff] }
  0xbf   : > { %479 = vst [vmem:[#allocation2 + $0x18] sm:$0xff] %v463_v19  ;;  %v1280_v22 = vmax.f32 %v492_v20, %v508_v21  ;;  %v1284_v24 = vpop.xlane.xlu1 %207 }
  0xc1   : > { %531 = vadd.xlane.f32.xlu0 %v1280_v22  ;;  %643 = vst [vmem:[#allocation2] sm:$0xff] %v1280_v22 }
  0xc2   : > { %v464_v23 = vpop.trf.xlu0 }
  0xc3   : > { %480 = vst [vmem:[#allocation2 + $0x20] sm:$0xff] %v464_v23  ;;  %v1290_v30 = vpop.xlane.xlu1 %209 }
  0xc6   : > { %v465_v25 = vpop.trf.xlu0  ;;  %v494_v26 = vld [vmem:[#allocation2 + $0x10] ss:$2 sm:$0xff]  ;;  %v510_v27 = vld [vmem:[#allocation2 + $0x11] ss:$2 sm:$0xff] }
  0xc7   : > { %481 = vst [vmem:[#allocation2 + $0x28] sm:$0xff] %v465_v25  ;;  %v1286_v28 = vmax.f32 %v494_v26, %v510_v27  ;;  %v1294_v37 = vpop.xlane.xlu1 %211 }
  0xc9   : > { %533 = vadd.xlane.f32.xlu1 %v1286_v28  ;;  %644 = vst [vmem:[#allocation2 + $0x8] sm:$0xff] %v1286_v28 }
  0xca   : > { %v466_v29 = vpop.trf.xlu0 }
  0xcb   : > { %482 = vst [vmem:[#allocation2 + $0x30] sm:$0xff] %v466_v29  ;;  %v1302_v43 = vpop.xlane.xlu1 %213 }
  0xce   : > { %v467_v31 = vpop.trf.xlu0  ;;  %v496_v32 = vld [vmem:[#allocation2 + $0x20] ss:$2 sm:$0xff]  ;;  %v512_v33 = vld [vmem:[#allocation2 + $0x21] ss:$2 sm:$0xff] }
  0xcf   : > { %483 = vst [vmem:[#allocation2 + $0x38] sm:$0xff] %v467_v31  ;;  %v1292_v34 = vmax.f32 %v496_v32, %v512_v33  ;;  %v216_v46 = vpop.xlane.xlu1 %215  ;;  %v240_v31 = vmul.f32 0.0078125, %v1284_v24 }
  0xd0   : > { %v651_v35 = vld [vmem:[#allocation2] ss:$2 sm:$0xff]  ;;  %v658_v36 = vld [vmem:[#allocation2 + $0x1] ss:$2 sm:$0xff] }
  0xd1   : > { %535 = vadd.xlane.f32.xlu1 %v1292_v34  ;;  %645 = vst [vmem:[#allocation2 + $0x10] sm:$0xff] %v1292_v34  ;;  %v1298_v38 = vmax.f32 %v651_v35, %v658_v36 }
  0xd2   : > { %v468_v39 = vpop.trf.xlu0 }
  0xd3   : > { %484 = vst [vmem:[#allocation2 + $0x40] sm:$0xff] %v468_v39  ;;  %722 = vst [vmem:[#allocation2] sm:$0xff] %v1298_v38  ;;  %v1314_v55 = vpop.xlane.xlu1 %217 }
  0xd5   : > { %666 = vadd.xlane.f32.xlu1 %v1298_v38 }
  0xd6   : > { %v469_v40 = vpop.trf.xlu0  ;;  %v498_v41 = vld [vmem:[#allocation2 + $0x30] ss:$2 sm:$0xff]  ;;  %v514_v42 = vld [vmem:[#allocation2 + $0x31] ss:$2 sm:$0xff] }
  0xd7   : > { %485 = vst [vmem:[#allocation2 + $0x48] sm:$0xff] %v469_v40  ;;  %v1304_v44 = vmax.f32 %v498_v41, %v514_v42  ;;  %v220_v60 = vpop.xlane.xlu1 %219  ;;  %v1338_v41 = vsub.f32 %v1201_v0, %v240_v31  ;;  %v242_v42 = vmul.f32 0.0078125, %v1294_v37 }
  0xd9   : > { %537 = vadd.xlane.f32.xlu1 %v1304_v44  ;;  %646 = vst [vmem:[#allocation2 + $0x18] sm:$0xff] %v1304_v44  ;;  %v272_v0 = vmul.f32 %v1338_v41, %v1338_v41 }
  0xda   : > { %v470_v45 = vpop.trf.xlu0 }
  0xdb   : > { %486 = vst [vmem:[#allocation2 + $0x50] sm:$0xff] %v470_v45  ;;  %v222_v17 = vpop.xlane.xlu1 %221  ;;  %v241_v45 = vmul.f32 0.0078125, %v1290_v30 }
  0xdd   : > { %v1353_v37 = vsub.f32 %v1206_v1, %v241_v45  ;;  %v245_v1 = vmul.f32 0.0078125, %v1314_v55 }
  0xde   : > { %v471_v47 = vpop.trf.xlu0  ;;  %v500_v48 = vld [vmem:[#allocation2 + $0x40] ss:$2 sm:$0xff]  ;;  %v516_v49 = vld [vmem:[#allocation2 + $0x41] ss:$2 sm:$0xff] }
  0xdf   : > { %487 = vst [vmem:[#allocation2 + $0x58] sm:$0xff] %v471_v47  ;;  %v1308_v50 = vmax.f32 %v500_v48, %v516_v49  ;;  %v224_v23 = vpop.xlane.xlu1 %223  ;;  %v1347_v48 = vsub.f32 %v1211_v2, %v242_v42  ;;  %v244_v49 = vmul.f32 0.0078125, %v216_v46 }
  0xe0   : > { %v653_v51 = vld [vmem:[#allocation2 + $0x10] ss:$2 sm:$0xff]  ;;  %v659_v52 = vld [vmem:[#allocation2 + $0x11] ss:$2 sm:$0xff] }
  0xe1   : > { %539 = vadd.xlane.f32.xlu1 %v1308_v50  ;;  %647 = vst [vmem:[#allocation2 + $0x20] sm:$0xff] %v1308_v50  ;;  %v1312_v53 = vmax.f32 %v653_v51, %v659_v52  ;;  %v243_v51 = vmul.f32 0.0078125, %v1302_v43  ;;  %v1357_v30 = vsub.f32 %v1221_v4, %v244_v49  ;;  %v274_v46 = vmul.f32 %v1347_v48, %v1347_v48 }
  0xe2   : > { %v472_v54 = vpop.trf.xlu0  ;;  %v273_v43 = vmul.f32 %v1353_v37, %v1353_v37 }
  0xe3   : > { %488 = vst [vmem:[#allocation2 + $0x60] sm:$0xff] %v472_v54  ;;  %723 = vst [vmem:[#allocation2 + $0x8] sm:$0xff] %v1312_v53  ;;  %v226_v29 = vpop.xlane.xlu1 %225 }
  0xe5   : > { %668 = vadd.xlane.f32.xlu1 %v1312_v53 }
  0xe6   : > { %v473_v56 = vpop.trf.xlu0  ;;  %v502_v57 = vld [vmem:[#allocation2 + $0x50] ss:$2 sm:$0xff]  ;;  %v518_v58 = vld [vmem:[#allocation2 + $0x51] ss:$2 sm:$0xff] }
  0xe7   : > { %489 = vst [vmem:[#allocation2 + $0x68] sm:$0xff] %v473_v56  ;;  %v1318_v59 = vmax.f32 %v502_v57, %v518_v58  ;;  %v228_v35 = vpop.xlane.xlu1 %227  ;;  %v246_v56 = vmul.f32 0.0078125, %v220_v60  ;;  %v1364_v58 = vsub.f32 %v1216_v3, %v243_v51  ;;  %v248_v60 = vmul.f32 0.0078125, %v224_v23 }
  0xe8   : > { %v247_v3 = vmul.f32 0.0078125, %v222_v17  ;;  %v249_v23 = vmul.f32 0.0078125, %v226_v29 }
  0xe9   : > { %541 = vadd.xlane.f32.xlu1 %v1318_v59  ;;  %648 = vst [vmem:[#allocation2 + $0x28] sm:$0xff] %v1318_v59  ;;  %v1371_v4 = vsub.f32 %v1231_v6, %v246_v56  ;;  %v275_v55 = vmul.f32 %v1364_v58, %v1364_v58 }
  0xea   : > { %v474_v61 = vpop.trf.xlu0  ;;  %v726_v39 = vld [vmem:[#allocation2] ss:$2 sm:$0xff]  ;;  %v728_v40 = vld [vmem:[#allocation2 + $0x1] ss:$2 sm:$0xff]  ;;  %v1396_v31 = vsub.f32 %v1246_v9, %v249_v23 }
  0xeb   : > { %490 = vst [vmem:[#allocation2 + $0x70] sm:$0xff] %v474_v61  ;;  %v1344_v47 = vmax.f32 %v726_v39, %v728_v40  ;;  %v230_v24 = vpop.xlane.xlu1 %229  ;;  %v276_v61 = vmul.f32 %v1357_v30, %v1357_v30  ;;  %v278_v6 = vmul.f32 %v1371_v4, %v1371_v4 }
  0xec   : > { %v281_v9 = vmul.f32 %v1396_v31, %v1396_v31 }
  0xee   : > { %v475_v62 = vpop.trf.xlu0  ;;  %v504_v63 = vld [vmem:[#allocation2 + $0x60] ss:$2 sm:$0xff]  ;;  %v520_v16 = vld [vmem:[#allocation2 + $0x61] ss:$2 sm:$0xff] }
  0xef   : > { %491 = vst [vmem:[#allocation2 + $0x78] sm:$0xff] %v475_v62  ;;  %v1322_v18 = vmax.f32 %v504_v63, %v520_v16  ;;  %v232_v57 = vpop.xlane.xlu1 %231  ;;  %v1376_v62 = vsub.f32 %v1226_v5, %v245_v1  ;;  %v1381_v16 = vsub.f32 %v1241_v8, %v248_v60 }
  0xf0   : > { %v655_v19 = vld [vmem:[#allocation2 + $0x20] ss:$2 sm:$0xff]  ;;  %v660_v20 = vld [vmem:[#allocation2 + $0x21] ss:$2 sm:$0xff] }
  0xf1   : > { %543 = vadd.xlane.f32.xlu1 %v1322_v18  ;;  %649 = vst [vmem:[#allocation2 + $0x30] sm:$0xff] %v1322_v18  ;;  %v1326_v21 = vmax.f32 %v655_v19, %v660_v20  ;;  %v250_v19 = vmul.f32 0.0078125, %v228_v35  ;;  %v1386_v20 = vsub.f32 %v1236_v7, %v247_v3  ;;  %v277_v5 = vmul.f32 %v1376_v62, %v1376_v62 }
  0xf2   : > { %v280_v8 = vmul.f32 %v1381_v16, %v1381_v16 }
  0xf3   : > { %724 = vst [vmem:[#allocation2 + $0x10] sm:$0xff] %v1326_v21  ;;  %v234_v63 = vpop.xlane.xlu1 %233  ;;  %v1391_v17 = vsub.f32 %v1251_v10, %v250_v19  ;;  %v279_v7 = vmul.f32 %v1386_v20, %v1386_v20 }
  0xf4   : > { %v253_v39 = vmul.f32 0.0078125, %v234_v63 }
  0xf5   : > { %670 = vadd.xlane.f32.xlu1 %v1326_v21  ;;  %v282_v10 = vmul.f32 %v1391_v17, %v1391_v17 }
  0xf6   : > { %v506_v25 = vld [vmem:[#allocation2 + $0x70] ss:$2 sm:$0xff]  ;;  %v522_v26 = vld [vmem:[#allocation2 + $0x71] ss:$2 sm:$0xff]  ;;  %v1416_v45 = vsub.f32 %v1266_v13, %v253_v39 }
  0xf7   : > { %v1330_v27 = vmax.f32 %v506_v25, %v522_v26  ;;  %v252_v25 = vmul.f32 0.0078125, %v232_v57  ;;  %v236_v26 = vpop.xlane.xlu1 %235 }
  0xf9   : > { %545 = vadd.xlane.f32.xlu1 %v1330_v27  ;;  %650 = vst [vmem:[#allocation2 + $0x38] sm:$0xff] %v1330_v27  ;;  %v1401_v29 = vsub.f32 %v1261_v12, %v252_v25 }
  0xfb   : > { %v238_v40 = vpop.xlane.xlu1 %237  ;;  %v284_v12 = vmul.f32 %v1401_v29, %v1401_v29 }
 0x100   : > { %v657_v32 = vld [vmem:[#allocation2 + $0x30] ss:$2 sm:$0xff]  ;;  %v661_v33 = vld [vmem:[#allocation2 + $0x31] ss:$2 sm:$0xff] }
 0x101   : > { %v1335_v36 = vmax.f32 %v657_v32, %v661_v33  ;;  %v251_v32 = vmul.f32 0.0078125, %v230_v24  ;;  %v254_v33 = vmul.f32 0.0078125, %v236_v26  ;;  %v255_v24 = vmul.f32 0.0078125, %v238_v40 }
 0x103   : > { %672 = vadd.xlane.f32.xlu1 %v1335_v36  ;;  %725 = vst [vmem:[#allocation2 + $0x18] sm:$0xff] %v1335_v36  ;;  %v1406_v35 = vsub.f32 %v1256_v11, %v251_v32  ;;  %v1411_v42 = vsub.f32 %v1271_v14, %v254_v33  ;;  %v285_v14 = vmul.f32 %v1416_v45, %v1416_v45 }
 0x105   : > { %v283_v11 = vmul.f32 %v1406_v35, %v1406_v35  ;;  %v286_v49 = vmul.f32 %v1411_v42, %v1411_v42 }
 0x107   : > { %732 = vadd.xlane.f32.xlu1 %v1344_v47 }
 0x10a   : > { %v727_v52 = vld [vmem:[#allocation2 + $0x10] ss:$2 sm:$0xff]  ;;  %v729_v54 = vld [vmem:[#allocation2 + $0x11] ss:$2 sm:$0xff] }
 0x10b   : > { %288 = vadd.xlane.f32.xlu1 %v272_v0  ;;  %v1359_v2 = vmax.f32 %v727_v52, %v729_v54  ;;  %v1423_v0 = vsub.f32 %v1276_v15, %v255_v24 }
 0x10d   : > { %734 = vadd.xlane.f32.xlu0 %v1359_v2  ;;  %v287_v13 = vmul.f32 %v1423_v0, %v1423_v0 }
 0x10f   : > { %292 = vadd.xlane.f32.xlu1 %v274_v46 }
 0x111   : > { %290 = vadd.xlane.f32.xlu0 %v273_v43 }
 0x113   : > { %296 = vadd.xlane.f32.xlu1 %v276_v61 }
 0x115   : > { %294 = vadd.xlane.f32.xlu0 %v275_v55 }
 0x117   : > { %300 = vadd.xlane.f32.xlu1 %v278_v6 }
 0x119   : > { %298 = vadd.xlane.f32.xlu0 %v277_v5 }
 0x11b   : > { %304 = vadd.xlane.f32.xlu1 %v280_v8 }
 0x11d   : > { %302 = vadd.xlane.f32.xlu0 %v279_v7 }
 0x11f   : > { %308 = vadd.xlane.f32.xlu1 %v282_v10 }
 0x121   : > { %306 = vadd.xlane.f32.xlu0 %v281_v9 }
 0x123   : > { %312 = vadd.xlane.f32.xlu1 %v284_v12 }
 0x125   : > { %310 = vadd.xlane.f32.xlu0 %v283_v11 }
 0x127   : > { %316 = vadd.xlane.f32.xlu1 %v286_v49 }
 0x129   : > { %314 = vadd.xlane.f32.xlu0 %v285_v14 }
 0x12d   : > { %318 = vadd.xlane.f32.xlu0 %v287_v13 }
 0x14a   : > { %v532_v51 = vpop.xlane.xlu0 %531 }
 0x14b   : > { %v547_v52 = vmul.f32 0.0078125, %v532_v51 }
 0x14d   : > { %v1430_v54 = vsub.f32 %v1280_v22, %v547_v52 }
 0x14f   : > { %v563_v56 = vmul.f32 %v1430_v54, %v1430_v54 }
 0x151   : > { %571 = vadd.xlane.f32.xlu1 %v563_v56 }
 0x152   : > { %v534_v15 = vpop.xlane.xlu1 %533 }
 0x153   : > { %v548_v46 = vmul.f32 0.0078125, %v534_v15 }
 0x155   : > { %v1435_v57 = vsub.f32 %v1286_v28, %v548_v46 }
 0x157   : > { %v564_v1 = vmul.f32 %v1435_v57, %v1435_v57 }
 0x159   : > { %573 = vadd.xlane.f32.xlu0 %v564_v1 }
 0x15a   : > { %v536_v43 = vpop.xlane.xlu1 %535 }
 0x15b   : > { %v549_v60 = vmul.f32 0.0078125, %v536_v43 }
 0x15d   : > { %v1440_v61 = vsub.f32 %v1292_v34, %v549_v60 }
 0x15e   : > { %v667_v22 = vpop.xlane.xlu1 %666 }
 0x15f   : > { %v674_v3 = vmul.f32 0.0078125, %v667_v22  ;;  %v565_v55 = vmul.f32 %v1440_v61, %v1440_v61 }
 0x161   : > { %v1445_v63 = vsub.f32 %v1298_v38, %v674_v3  ;;  %575 = vadd.xlane.f32.xlu1 %v565_v55 }
 0x162   : > { %v538_v28 = vpop.xlane.xlu1 %537 }
 0x163   : > { %v550_v19 = vmul.f32 0.0078125, %v538_v28  ;;  %v682_v6 = vmul.f32 %v1445_v63, %v1445_v63 }
 0x165   : > { %v1450_v23 = vsub.f32 %v1304_v44, %v550_v19  ;;  %686 = vadd.xlane.f32.xlu1 %v682_v6 }
 0x167   : > { %v566_v34 = vmul.f32 %v1450_v23, %v1450_v23 }
 0x169   : > { %577 = vadd.xlane.f32.xlu0 %v566_v34 }
 0x16a   : > { %v540_v5 = vpop.xlane.xlu1 %539 }
 0x16b   : > { %v551_v25 = vmul.f32 0.0078125, %v540_v5 }
 0x16d   : > { %v1455_v8 = vsub.f32 %v1308_v50, %v551_v25 }
 0x16e   : > { %v669_v38 = vpop.xlane.xlu1 %668 }
 0x16f   : > { %v675_v26 = vmul.f32 0.0078125, %v669_v38  ;;  %v567_v32 = vmul.f32 %v1455_v8, %v1455_v8 }
 0x171   : > { %v1460_v7 = vsub.f32 %v1312_v53, %v675_v26  ;;  %579 = vadd.xlane.f32.xlu1 %v567_v32 }
 0x172   : > { %v542_v44 = vpop.xlane.xlu1 %541 }
 0x173   : > { %v552_v10 = vmul.f32 0.0078125, %v542_v44  ;;  %v683_v33 = vmul.f32 %v1460_v7, %v1460_v7 }
 0x175   : > { %v1465_v39 = vsub.f32 %v1318_v59, %v552_v10  ;;  %688 = vadd.xlane.f32.xlu0 %v683_v33 }
 0x177   : > { %v568_v50 = vmul.f32 %v1465_v39, %v1465_v39 }
 0x179   : > { %581 = vadd.xlane.f32.xlu0 %v568_v50 }
 0x17a   : > { %v544_v9 = vpop.xlane.xlu1 %543 }
 0x17b   : > { %v553_v40 = vmul.f32 0.0078125, %v544_v9 }
 0x17d   : > { %v1470_v12 = vsub.f32 %v1322_v18, %v553_v40 }
 0x17e   : > { %v671_v53 = vpop.xlane.xlu1 %670 }
 0x17f   : > { %v676_v11 = vmul.f32 0.0078125, %v671_v53  ;;  %v569_v24 = vmul.f32 %v1470_v12, %v1470_v12 }
 0x181   : > { %v1475_v49 = vsub.f32 %v1326_v21, %v676_v11  ;;  %583 = vadd.xlane.f32.xlu1 %v569_v24 }
 0x182   : > { %v546_v59 = vpop.xlane.xlu1 %545 }
 0x183   : > { %v554_v14 = vmul.f32 0.0078125, %v546_v59  ;;  %v684_v13 = vmul.f32 %v1475_v49, %v1475_v49 }
 0x185   : > { %v1480_v51 = vsub.f32 %v1330_v27, %v554_v14  ;;  %690 = vadd.xlane.f32.xlu1 %v684_v13 }
 0x187   : > { %v570_v18 = vmul.f32 %v1480_v51, %v1480_v51 }
 0x189   : > { %585 = vadd.xlane.f32.xlu0 %v570_v18  ;;  %v1503_v18 = vld [vmem:[%s1683_s1] ss:$0 sm:$0xff] }
 0x18c   : > { %v673_v52 = vpop.xlane.xlu1 %672 }
 0x18d   : > { %v677_v56 = vmul.f32 0.0078125, %v673_v52 }
 0x18f   : > { %v1485_v15 = vsub.f32 %v1335_v36, %v677_v56 }
 0x190   : > { %v733_v21 = vpop.xlane.xlu1 %732 }
 0x191   : > { %v736_v46 = vmul.f32 0.0078125, %v733_v21  ;;  %v685_v1 = vmul.f32 %v1485_v15, %v1485_v15 }
 0x193   : > { %v1490_v43 = vsub.f32 %v1344_v47, %v736_v46  ;;  %692 = vadd.xlane.f32.xlu0 %v685_v1  ;;  %v1509_v1 = vld [vmem:[%s1684_s2] ss:$0 sm:$0xff] }
 0x194   : > { %v289_v27 = vpop.xlane.xlu1 %288 }
 0x195   : > { %v320_v60 = vmul.f32 0.0078125, %v289_v27  ;;  %v740_v22 = vmul.f32 %v1490_v43, %v1490_v43 }
 0x196   : > { %v735_v3 = vpop.xlane.xlu0 %734 }
 0x197   : > { %v336_v55 = vadd.f32 1e-05, %v320_v60  ;;  %v737_v28 = vmul.f32 0.0078125, %v735_v3  ;;  %742 = vadd.xlane.f32.xlu1 %v740_v22 }
 0x198   : > { %v293_v36 = vpop.xlane.xlu1 %292 }
 0x199   : > { %913 = vrsqrt.f32 %v336_v55  ;;  %v1495_v19 = vsub.f32 %v1359_v2, %v737_v28  ;;  %v322_v6 = vmul.f32 0.0078125, %v293_v36 }
 0x19a   : > { %v291_v34 = vpop.xlane.xlu0 %290 }
 0x19b   : > { %v338_v5 = vadd.f32 1e-05, %v322_v6  ;;  %v321_v47 = vmul.f32 0.0078125, %v291_v34  ;;  %v741_v25 = vmul.f32 %v1495_v19, %v1495_v19 }
 0x19c   : > { %v297_v38 = vpop.xlane.xlu1 %296 }
 0x19d   : > { %915 = vrsqrt.f32 %v338_v5  ;;  %v337_v26 = vadd.f32 1e-05, %v321_v47  ;;  %v324_v32 = vmul.f32 0.0078125, %v297_v38  ;;  %744 = vadd.xlane.f32.xlu0 %v741_v25 }
 0x19e   : > { %v295_v44 = vpop.xlane.xlu0 %294 }
 0x19f   : > { %917 = vrsqrt.f32 %v337_v26  ;;  %v340_v10 = vadd.f32 1e-05, %v324_v32  ;;  %v323_v33 = vmul.f32 0.0078125, %v295_v44 }
 0x1a0   : > { %v301_v50 = vpop.xlane.xlu1 %300 }
 0x1a1   : > { %919 = vrsqrt.f32 %v340_v10  ;;  %v339_v2 = vadd.f32 1e-05, %v323_v33  ;;  %v326_v9 = vmul.f32 0.0078125, %v301_v50 }
 0x1a2   : > { %v299_v40 = vpop.xlane.xlu0 %298 }
 0x1a3   : > { %921 = vrsqrt.f32 %v339_v2  ;;  %v342_v53 = vadd.f32 1e-05, %v326_v9  ;;  %v325_v11 = vmul.f32 0.0078125, %v299_v40 }
 0x1a4   : > { %v305_v24 = vpop.xlane.xlu1 %304 }
 0x1a5   : > { %923 = vrsqrt.f32 %v342_v53  ;;  %v341_v59 = vadd.f32 1e-05, %v325_v11  ;;  %v328_v14 = vmul.f32 0.0078125, %v305_v24 }
 0x1a6   : > { %v914_v13 = vpop.eup %913  ;;  %v303_v52 = vpop.xlane.xlu0 %302 }
 0x1a7   : > { %v368_v56 = vmul.f32 %v914_v13, %v1338_v41  ;;  %925 = vrsqrt.f32 %v341_v59  ;;  %v344_v21 = vadd.f32 1e-05, %v328_v14  ;;  %v327_v46 = vmul.f32 0.0078125, %v303_v52 }
 0x1a8   : > { %v309_v27 = vpop.xlane.xlu1 %308 }
 0x1a9   : > { %v390_v60 = vmul.f32 %v1503_v18, %v368_v56  ;;  %927 = vrsqrt.f32 %v344_v21  ;;  %v343_v22 = vadd.f32 1e-05, %v327_v46  ;;  %v330_v3 = vmul.f32 0.0078125, %v309_v27 }
 0x1aa   : > { %v916_v55 = vpop.eup %915  ;;  %v307_v28 = vpop.xlane.xlu0 %306 }
 0x1ab   : > { %v412_v36 = vadd.f32 %v1509_v1, %v390_v60  ;;  %v370_v41 = vmul.f32 %v916_v55, %v1347_v48  ;;  %929 = vrsqrt.f32 %v343_v22  ;;  %v346_v6 = vadd.f32 1e-05, %v330_v3 }
 0x1ac   : > { %v918_v34 = vpop.eup %917  ;;  %v329_v5 = vmul.f32 0.0078125, %v307_v28  ;;  %v313_v47 = vpop.xlane.xlu1 %312 }
 0x1ad   : > { %428 = vst [vmem:[%s1514_s17] sm:$0xff] %v412_v36  ;;  %v392_v25 = vmul.f32 %v1503_v18, %v370_v41  ;;  %v369_v38 = vmul.f32 %v918_v34, %v1353_v37  ;;  %931 = vrsqrt.f32 %v346_v6  ;;  %v332_v26 = vmul.f32 0.0078125, %v313_v47 }
 0x1ae   : > { %v920_v32 = vpop.eup %919  ;;  %v345_v44 = vadd.f32 1e-05, %v329_v5  ;;  %v311_v10 = vpop.xlane.xlu0 %310 }
 0x1af   : > { %v414_v48 = vadd.f32 %v1509_v1, %v392_v25  ;;  %v391_v33 = vmul.f32 %v1503_v18, %v369_v38  ;;  %v372_v50 = vmul.f32 %v920_v32, %v1357_v30  ;;  %v348_v2 = vadd.f32 1e-05, %v332_v26 }
 0x1b0   : > { %v922_v9 = vpop.eup %921  ;;  %933 = vrsqrt.f32 %v345_v44  ;;  %v331_v40 = vmul.f32 0.0078125, %v311_v10  ;;  %v317_v53 = vpop.xlane.xlu1 %316 }
 0x1b1   : > { %430 = vst [vmem:[%s1514_s17 + $0x10] sm:$0xff] %v414_v48  ;;  %v413_v37 = vadd.f32 %v1509_v1, %v391_v33  ;;  %v394_v11 = vmul.f32 %v1503_v18, %v372_v50  ;;  %v371_v24 = vmul.f32 %v922_v9, %v1364_v58  ;;  %935 = vrsqrt.f32 %v348_v2 }
 0x1b2   : > { %v924_v59 = vpop.eup %923  ;;  %v347_v14 = vadd.f32 1e-05, %v331_v40  ;;  %v334_v13 = vmul.f32 0.0078125, %v317_v53  ;;  %v315_v52 = vpop.xlane.xlu0 %314 }
 0x1b3   : > { %429 = vst [vmem:[%s1514_s17 + $0x8] sm:$0xff] %v413_v37  ;;  %v416_v30 = vadd.f32 %v1509_v1, %v394_v11  ;;  %v393_v56 = vmul.f32 %v1503_v18, %v371_v24  ;;  %v374_v21 = vmul.f32 %v924_v59, %v1371_v4  ;;  %v333_v46 = vmul.f32 0.0078125, %v315_v52 }
 0x1b4   : > { %v926_v27 = vpop.eup %925  ;;  %937 = vrsqrt.f32 %v347_v14  ;;  %v350_v60 = vadd.f32 1e-05, %v334_v13 }
 0x1b5   : > { %432 = vst [vmem:[%s1514_s17 + $0x20] sm:$0xff] %v416_v30  ;;  %v415_v58 = vadd.f32 %v1509_v1, %v393_v56  ;;  %v396_v22 = vmul.f32 %v1503_v18, %v374_v21  ;;  %v373_v3 = vmul.f32 %v926_v27, %v1376_v62  ;;  %v349_v55 = vadd.f32 1e-05, %v333_v46 }
 0x1b6   : > { %v928_v28 = vpop.eup %927  ;;  %939 = vrsqrt.f32 %v350_v60  ;;  %v319_v36 = vpop.xlane.xlu0 %318 }
 0x1b7   : > { %431 = vst [vmem:[%s1514_s17 + $0x18] sm:$0xff] %v415_v58  ;;  %v418_v4 = vadd.f32 %v1509_v1, %v396_v22  ;;  %v395_v41 = vmul.f32 %v1503_v18, %v373_v3  ;;  %v376_v6 = vmul.f32 %v928_v28, %v1381_v16  ;;  %941 = vrsqrt.f32 %v349_v55 }
 0x1b8   : > { %v930_v34 = vpop.eup %929  ;;  %v335_v5 = vmul.f32 0.0078125, %v319_v36 }
 0x1b9   : > { %434 = vst [vmem:[%s1514_s17 + $0x30] sm:$0xff] %v418_v4  ;;  %v417_v47 = vadd.f32 %v1509_v1, %v395_v41  ;;  %v398_v62 = vmul.f32 %v1503_v18, %v376_v6  ;;  %v375_v25 = vmul.f32 %v930_v34, %v1386_v20 }
 0x1ba   : > { %v932_v38 = vpop.eup %931  ;;  %v351_v26 = vadd.f32 1e-05, %v335_v5 }
 0x1bb   : > { %433 = vst [vmem:[%s1514_s17 + $0x28] sm:$0xff] %v417_v47  ;;  %v420_v32 = vadd.f32 %v1509_v1, %v398_v62  ;;  %v397_v16 = vmul.f32 %v1503_v18, %v375_v25  ;;  %v378_v44 = vmul.f32 %v932_v38, %v1391_v17 }
 0x1bc   : > { %943 = vrsqrt.f32 %v351_v26 }
 0x1bd   : > { %v934_v10 = vpop.eup %933  ;;  %436 = vst [vmem:[%s1514_s17 + $0x40] sm:$0xff] %v420_v32  ;;  %v419_v48 = vadd.f32 %v1509_v1, %v397_v16  ;;  %v400_v33 = vmul.f32 %v1503_v18, %v378_v44 }
 0x1be   : > { %v936_v50 = vpop.eup %935  ;;  %v377_v20 = vmul.f32 %v934_v10, %v1396_v31 }
 0x1bf   : > { %435 = vst [vmem:[%s1514_s17 + $0x38] sm:$0xff] %v419_v48  ;;  %v422_v2 = vadd.f32 %v1509_v1, %v400_v33  ;;  %v380_v9 = vmul.f32 %v936_v50, %v1401_v29 }
 0x1c0   : > { %v399_v40 = vmul.f32 %v1503_v18, %v377_v20 }
 0x1c1   : > { %v938_v17 = vpop.eup %937  ;;  %438 = vst [vmem:[%s1514_s17 + $0x50] sm:$0xff] %v422_v2  ;;  %v402_v53 = vmul.f32 %v1503_v18, %v380_v9 }
 0x1c2   : > { %v421_v37 = vadd.f32 %v1509_v1, %v399_v40  ;;  %v379_v11 = vmul.f32 %v938_v17, %v1406_v35 }
 0x1c3   : > { %v940_v24 = vpop.eup %939  ;;  %v424_v31 = vadd.f32 %v1509_v1, %v402_v53 }
 0x1c4   : > { %v942_v59 = vpop.eup %941  ;;  %437 = vst [vmem:[%s1514_s17 + $0x48] sm:$0xff] %v421_v37  ;;  %v401_v29 = vmul.f32 %v1503_v18, %v379_v11  ;;  %v382_v14 = vmul.f32 %v940_v24, %v1411_v42 }
 0x1c5   : > { %440 = vst [vmem:[%s1514_s17 + $0x60] sm:$0xff] %v424_v31  ;;  %v381_v13 = vmul.f32 %v942_v59, %v1416_v45 }
 0x1c6   : > { %v423_v52 = vadd.f32 %v1509_v1, %v401_v29  ;;  %v404_v30 = vmul.f32 %v1503_v18, %v382_v14 }
 0x1c7   : > { %v403_v35 = vmul.f32 %v1503_v18, %v381_v13 }
 0x1c8   : > { %439 = vst [vmem:[%s1514_s17 + $0x58] sm:$0xff] %v423_v52  ;;  %v426_v56 = vadd.f32 %v1509_v1, %v404_v30 }
 0x1c9   : > { %v944_v21 = vpop.eup %943  ;;  %v425_v46 = vadd.f32 %v1509_v1, %v403_v35 }
 0x1ca   : > { %442 = vst [vmem:[%s1514_s17 + $0x70] sm:$0xff] %v426_v56  ;;  %v383_v27 = vmul.f32 %v944_v21, %v1423_v0 }
 0x1cb   : > { %441 = vst [vmem:[%s1514_s17 + $0x68] sm:$0xff] %v425_v46 }
 0x1cc   : > { %v405_v42 = vmul.f32 %v1503_v18, %v383_v27 }
 0x1ce   : > { %v427_v45 = vadd.f32 %v1509_v1, %v405_v42 }
 0x1d0   : > { %443 = vst [vmem:[%s1514_s17 + $0x78] sm:$0xff] %v427_v45 }
 0x1da   : > { %v572_v60 = vpop.xlane.xlu1 %571 }
 0x1db   : > { %v587_v58 = vmul.f32 0.0078125, %v572_v60 }
 0x1dd   : > { %v595_v22 = vadd.f32 1e-05, %v587_v58 }
 0x1df   : > { %945 = vrsqrt.f32 %v595_v22 }
 0x1e2   : > { %v574_v3 = vpop.xlane.xlu0 %573 }
 0x1e3   : > { %v588_v55 = vmul.f32 0.0078125, %v574_v3 }
 0x1e5   : > { %v596_v28 = vadd.f32 1e-05, %v588_v55 }
 0x1e7   : > { %947 = vrsqrt.f32 %v596_v28 }
 0x1ea   : > { %v576_v36 = vpop.xlane.xlu1 %575 }
 0x1eb   : > { %v589_v4 = vmul.f32 0.0078125, %v576_v36 }
 0x1ec   : > { %v946_v41 = vpop.eup %945 }
 0x1ed   : > { %v611_v0 = vmul.f32 %v946_v41, %v1430_v54  ;;  %v597_v6 = vadd.f32 1e-05, %v589_v4 }
 0x1ee   : > { %v687_v34 = vpop.xlane.xlu1 %686 }
 0x1ef   : > { %v619_v5 = vmul.f32 %v1503_v18, %v611_v0  ;;  %949 = vrsqrt.f32 %v597_v6  ;;  %v694_v47 = vmul.f32 0.0078125, %v687_v34 }
 0x1f1   : > { %v627_v62 = vadd.f32 %v1509_v1, %v619_v5  ;;  %v698_v25 = vadd.f32 1e-05, %v694_v47 }
 0x1f2   : > { %v578_v38 = vpop.xlane.xlu0 %577 }
 0x1f3   : > { %635 = vst [vmem:[%s1514_s17 + $0x80] sm:$0xff] %v627_v62  ;;  %951 = vrsqrt.f32 %v698_v25  ;;  %v590_v26 = vmul.f32 0.0078125, %v578_v38 }
 0x1f4   : > { %v948_v32 = vpop.eup %947 }
 0x1f5   : > { %v612_v16 = vmul.f32 %v948_v32, %v1435_v57  ;;  %v598_v44 = vadd.f32 1e-05, %v590_v26 }
 0x1f7   : > { %v620_v54 = vmul.f32 %v1503_v18, %v612_v16  ;;  %953 = vrsqrt.f32 %v598_v44 }
 0x1f9   : > { %v628_v10 = vadd.f32 %v1509_v1, %v620_v54 }
 0x1fa   : > { %v580_v48 = vpop.xlane.xlu1 %579 }
 0x1fb   : > { %636 = vst [vmem:[%s1514_s17 + $0x88] sm:$0xff] %v628_v10  ;;  %v591_v33 = vmul.f32 0.0078125, %v580_v48 }
 0x1fc   : > { %v950_v50 = vpop.eup %949 }
 0x1fd   : > { %v613_v20 = vmul.f32 %v950_v50, %v1440_v61  ;;  %v599_v2 = vadd.f32 1e-05, %v591_v33 }
 0x1fe   : > { %v689_v9 = vpop.xlane.xlu0 %688 }
 0x1ff   : > { %v621_v40 = vmul.f32 %v1503_v18, %v613_v20  ;;  %955 = vrsqrt.f32 %v599_v2  ;;  %v695_v57 = vmul.f32 0.0078125, %v689_v9 }
 0x200   : > { %v952_v17 = vpop.eup %951 }
 0x201   : > { %v629_v53 = vadd.f32 %v1509_v1, %v621_v40  ;;  %v706_v37 = vmul.f32 %v952_v17, %v1445_v63  ;;  %v699_v11 = vadd.f32 1e-05, %v695_v57 }
 0x202   : > { %v582_v24 = vpop.xlane.xlu0 %581 }
 0x203   : > { %637 = vst [vmem:[%s1514_s17 + $0x90] sm:$0xff] %v629_v53  ;;  %v710_v31 = vmul.f32 %v1503_v18, %v706_v37  ;;  %957 = vrsqrt.f32 %v699_v11  ;;  %v592_v61 = vmul.f32 0.0078125, %v582_v24 }
 0x204   : > { %v954_v59 = vpop.eup %953 }
 0x205   : > { %v714_v29 = vadd.f32 %v1509_v1, %v710_v31  ;;  %v614_v14 = vmul.f32 %v954_v59, %v1450_v23  ;;  %v600_v13 = vadd.f32 1e-05, %v592_v61 }
 0x207   : > { %718 = vst [vmem:[%s1514_s17 + $0xc0] sm:$0xff] %v714_v29  ;;  %v622_v52 = vmul.f32 %v1503_v18, %v614_v14  ;;  %959 = vrsqrt.f32 %v600_v13 }
 0x209   : > { %v630_v63 = vadd.f32 %v1509_v1, %v622_v52 }
 0x20a   : > { %v584_v30 = vpop.xlane.xlu1 %583 }
 0x20b   : > { %638 = vst [vmem:[%s1514_s17 + $0x98] sm:$0xff] %v630_v63  ;;  %v593_v35 = vmul.f32 0.0078125, %v584_v30 }
 0x20c   : > { %v956_v56 = vpop.eup %955 }
 0x20d   : > { %v615_v21 = vmul.f32 %v956_v56, %v1455_v8  ;;  %v601_v46 = vadd.f32 1e-05, %v593_v35 }
 0x20e   : > { %v691_v27 = vpop.xlane.xlu1 %690 }
 0x20f   : > { %v623_v42 = vmul.f32 %v1503_v18, %v615_v21  ;;  %961 = vrsqrt.f32 %v601_v46  ;;  %v696_v23 = vmul.f32 0.0078125, %v691_v27 }
 0x210   : > { %v958_v45 = vpop.eup %957 }
 0x211   : > { %v631_v60 = vadd.f32 %v1509_v1, %v623_v42  ;;  %v707_v58 = vmul.f32 %v958_v45, %v1460_v7  ;;  %v700_v22 = vadd.f32 1e-05, %v696_v23 }
 0x212   : > { %v586_v3 = vpop.xlane.xlu0 %585 }
 0x213   : > { %639 = vst [vmem:[%s1514_s17 + $0xa0] sm:$0xff] %v631_v60  ;;  %v711_v55 = vmul.f32 %v1503_v18, %v707_v58  ;;  %963 = vrsqrt.f32 %v700_v22  ;;  %v594_v8 = vmul.f32 0.0078125, %v586_v3 }
 0x214   : > { %v960_v28 = vpop.eup %959 }
 0x215   : > { %v715_v36 = vadd.f32 %v1509_v1, %v711_v55  ;;  %v616_v4 = vmul.f32 %v960_v28, %v1465_v39  ;;  %v602_v41 = vadd.f32 1e-05, %v594_v8 }
 0x217   : > { %719 = vst [vmem:[%s1514_s17 + $0xc8] sm:$0xff] %v715_v36  ;;  %v624_v0 = vmul.f32 %v1503_v18, %v616_v4  ;;  %965 = vrsqrt.f32 %v602_v41 }
 0x219   : > { %v632_v7 = vadd.f32 %v1509_v1, %v624_v0 }
 0x21b   : > { %640 = vst [vmem:[%s1514_s17 + $0xa8] sm:$0xff] %v632_v7 }
 0x21c   : > { %v962_v6 = vpop.eup %961  ;;  %v693_v34 = vpop.xlane.xlu0 %692 }
 0x21d   : > { %v617_v5 = vmul.f32 %v962_v6, %v1470_v12  ;;  %v697_v47 = vmul.f32 0.0078125, %v693_v34 }
 0x21f   : > { %v625_v62 = vmul.f32 %v1503_v18, %v617_v5  ;;  %v701_v25 = vadd.f32 1e-05, %v697_v47 }
 0x220   : > { %v964_v38 = vpop.eup %963  ;;  %v743_v39 = vpop.xlane.xlu1 %742 }
 0x221   : > { %v633_v26 = vadd.f32 %v1509_v1, %v625_v62  ;;  %v708_v32 = vmul.f32 %v964_v38, %v1475_v49  ;;  %967 = vrsqrt.f32 %v701_v25  ;;  %v746_v16 = vmul.f32 0.0078125, %v743_v39 }
 0x223   : > { %641 = vst [vmem:[%s1514_s17 + $0xb0] sm:$0xff] %v633_v26  ;;  %v712_v44 = vmul.f32 %v1503_v18, %v708_v32  ;;  %v748_v54 = vadd.f32 1e-05, %v746_v16 }
 0x224   : > { %v966_v10 = vpop.eup %965 }
 0x225   : > { %v716_v12 = vadd.f32 %v1509_v1, %v712_v44  ;;  %v618_v48 = vmul.f32 %v966_v10, %v1480_v51  ;;  %969 = vrsqrt.f32 %v748_v54 }
 0x226   : > { %v745_v33 = vpop.xlane.xlu0 %744 }
 0x227   : > { %720 = vst [vmem:[%s1514_s17 + $0xd0] sm:$0xff] %v716_v12  ;;  %v626_v50 = vmul.f32 %v1503_v18, %v618_v48  ;;  %v747_v49 = vmul.f32 0.0078125, %v745_v33 }
 0x229   : > { %v634_v20 = vadd.f32 %v1509_v1, %v626_v50  ;;  %v749_v2 = vadd.f32 1e-05, %v747_v49 }
 0x22b   : > { %642 = vst [vmem:[%s1514_s17 + $0xb8] sm:$0xff] %v634_v20  ;;  %971 = vrsqrt.f32 %v749_v2 }
 0x22e   : > { %v968_v9 = vpop.eup %967 }
 0x22f   : > { %v709_v40 = vmul.f32 %v968_v9, %v1485_v15 }
 0x231   : > { %v713_v51 = vmul.f32 %v1503_v18, %v709_v40 }
 0x232   : > { %v970_v57 = vpop.eup %969 }
 0x233   : > { %v717_v17 = vadd.f32 %v1509_v1, %v713_v51  ;;  %v752_v53 = vmul.f32 %v970_v57, %v1490_v43 }
 0x235   : > { %721 = vst [vmem:[%s1514_s17 + $0xd8] sm:$0xff] %v717_v17  ;;  %v754_v37 = vmul.f32 %v1503_v18, %v752_v53 }
 0x237   : > { %v756_v11 = vadd.f32 %v1509_v1, %v754_v37 }
 0x238   : > { %v972_v24 = vpop.eup %971 }
 0x239   : > { %758 = vst [vmem:[%s1514_s17 + $0xe0] sm:$0xff] %v756_v11  ;;  %v753_v15 = vmul.f32 %v972_v24, %v1495_v19 }
 0x23b   : > { %v755_v31 = vmul.f32 %v1503_v18, %v753_v15 }
 0x23d   : > { %v757_v43 = vadd.f32 %v1509_v1, %v755_v31 }
 0x23f   : > { %759 = vst [vmem:[%s1514_s17 + $0xe8] sm:$0xff] %v757_v43 }
 0x240   : > { %1014 = shalt.err (!%p1011_p10)
}
 0x241   : > { %s1015_s10 = scalar_lea.hbm %s1635_s27, 3840  ;;  %s1019_s4 = scalar_lea.hbm %s1685_s3, 7680 }
 0x242   : > { %p1016_p0 = scmp.ne.s32.totalorder %s1635_s27, %s1015_s10  ;;  %p1020_p1 = scmp.lt.s32.totalorder %s1635_s27, %s1685_s3 }
 0x243   : > { %p1021_p3 = scmp.lt.s32.totalorder %s1019_s4, %s1015_s10 }
 0x244   : > { %p1017_p2 = pnand %p1016_p0, %p1694_p12 }
 0x245   : > { %p1022_p6 = por %p1021_p3, %p1020_p1 }
 0x246   : > { %p1018_p9 = pneg %p1017_p2 }
 0x248   : > { %p1023_p11 = pnand %p1022_p6, %p1018_p9 }
 0x24a   : > { %1026 = shalt.err (!%p1023_p11)
}
 0x24b   : > { %s1071_s8 = smov 128   ;;  %s1072_s17 = smov 8  }
 0x24c   : > { %865 = dma.vmem_to_hbm [thread:$0]  (%p1694_p12), %s1637_s20, 3840, %s1635_s27, %s761_s16, %s1071_s8, %s1071_s8, %s1072_s17  }
 0x24d PF: > { %s789_s19 = sand.u32 1, %s1053_s12   ;;  %p1695_p13 = scmp.ne.s32.totalorder %s1691_s25, 0 }
 0x24e   : > { %p1696_p4 = scmp.ge.s32.totalorder %s1065_s15, 2  ;;  %s790_s22 = scalar_lea.sflag [#allocation5], %s789_s19 }
 0x250   : > { %p872_p5 = pnand %p1696_p4, %p1695_p13 }
 0x252   : > { %p873_p7 = pneg %p872_p5 }
 0x254   : > { %1048 = dma.done.wait (%p873_p7), %s790_s22, 3840  }
 0x255   : > { %1050 = vsyncadd (%p873_p7), %s790_s22, 4294963456  ;;  %p16_p8 = scmp.ge.s32.totalorder %s1118_s18, 4   ;;  %s1697_s12 = smov %s1057_s13 }
 0x256   : > { %s1698_s13 = smov %s1061_s14  ;;  %s1699_s14 = smov %s1130_s21 }
 0x257   : > { %s1700_s15 = smov %s1118_s18  ;;  %18 = sbr.rel (!%p16_p8) target bundleno = 5 (0x5), region = 95 }
 0x25c   :  { %795 = vsyncpa [#allocation4], 1 }
 0x25d   :  { %797 = vsyncpa [#allocation4 + $0x1], 1 }
 0x25e   :  { %798 = vsyncpa [#allocation5], 1 }
 0x25f   :  { %800 = vsyncpa [#allocation5 + $0x1], 1 }

</bundles_post_ra>
